<compile_context>
chip_gen: v6e
topology: v6e:2x2x1
jax: 0.10.0
libtpu: 0.0.40
codegen_flags: <defaults>
</compile_context>

<pallas_src>
import functools

import jax
import jax.numpy as jnp
from jax import lax
from jax.experimental import pallas as pl
from jax.experimental.pallas import tpu as pltpu


def _round_up(x, m):
    return ((x + m - 1) // m) * m


def _linear_kernel(x_ref, w_ref, o_ref, acc_ref, *, k_size, tk, needs_k_mask):
    """One (tm, tn) output tile of y = x @ w.T, accumulated over the K grid axis.

    x_ref:   (tm, tk)       activations tile
    w_ref:   (tn, tk)       weight tile in PyTorch (out, in) layout
    o_ref:   (tm, tn)       output tile (written once, on the last K step)
    acc_ref: (tm, tn) f32   VMEM accumulator, resident across K steps
    """
    k = pl.program_id(2)

    x = x_ref[...]
    w = w_ref[...]
    if needs_k_mask:
        # K is not host-padded; zero the ragged K tail so edge-block garbage
        # never reaches valid accumulator entries.
        k_start = k * tk
        x_cols = k_start + lax.broadcasted_iota(jnp.int32, x.shape, 1)
        w_cols = k_start + lax.broadcasted_iota(jnp.int32, w.shape, 1)
        x = jnp.where(x_cols < k_size, x, jnp.zeros_like(x))
        w = jnp.where(w_cols < k_size, w, jnp.zeros_like(w))

    # Contract on the shared `in` axis (axis 1 of both operands): x @ w.T.
    part = lax.dot_general(
        x, w, (((1,), (1,)), ((), ())), preferred_element_type=jnp.float32)

    @pl.when(k == 0)
    def _():
        acc_ref[...] = part          # direct write: no zero-fill + re-read

    @pl.when(k > 0)
    def _():
        acc_ref[...] += part

    @pl.when(k == pl.num_programs(2) - 1)
    def _():
        o_ref[...] = acc_ref[...].astype(o_ref.dtype)


def one_param_forward(x, weight, *, tm=256, tn=512, tk=1024, compute_dtype=None):
    """y = x @ weight.T  (nn.Linear with bias=False).

    x:      (B, input_size)
    weight: (output_size, input_size)   -- PyTorch convention, NOT transposed
    compute_dtype: dtype fed to the MXU. Default: bfloat16 when x is float32
                   (fast path; f32 accumulation, output keeps x.dtype).
                   Pass jnp.float32 explicitly for full-precision compute.
    """
    B, K = x.shape
    N, Kw = weight.shape
    assert K == Kw, "weight inner dim must match x feature dim"

    out_dtype = x.dtype
    if compute_dtype is None:
        compute_dtype = jnp.bfloat16 if x.dtype == jnp.float32 else x.dtype
    x = x.astype(compute_dtype)
    weight = weight.astype(compute_dtype)

    # Sublane alignment: 16 rows for 16-bit types (full vreg packing), 8 for f32.
    sublane = 16 if jnp.dtype(compute_dtype).itemsize < 4 else 8

    # Clamp tiles to the (lane-rounded) problem so tiny shapes stay tiny.
    tm = min(tm, _round_up(B, sublane))
    tn = min(tn, _round_up(N, 128))
    tk = min(tk, _round_up(K, 128))

    gm = pl.cdiv(B, tm)
    if gm == 1:
        # Small-batch regime (weight-bandwidth bound):
        #  * cover K with a single (capped) tile so x is DMA'd once per N tile;
        tk = min(_round_up(K, 128), 2048)
        #  * make sure the N grid has >= 2 tiles so both v7x TensorCores get
        #    work when the M grid is degenerate.
        n_rounded = _round_up(N, 128)
        if n_rounded >= 256 and pl.cdiv(n_rounded, tn) < 2:
            tn = _round_up(pl.cdiv(n_rounded, 2), 128)

    gn = pl.cdiv(N, tn)
    gk = pl.cdiv(K, tk)
    needs_k_mask = (K % tk) != 0

    # Truthful HBM estimate: x re-read once per N tile, w once per M tile.
    in_bytes = jnp.dtype(compute_dtype).itemsize
    out_bytes = jnp.dtype(out_dtype).itemsize
    cost = pl.CostEstimate(
        flops=2 * B * N * K,
        transcendentals=0,
        bytes_accessed=(B * K * in_bytes) * gn
        + (N * K * in_bytes) * gm
        + B * N * out_bytes,
    )

    kernel = functools.partial(
        _linear_kernel, k_size=K, tk=tk, needs_k_mask=needs_k_mask)

    return pl.pallas_call(
        kernel,
        out_shape=jax.ShapeDtypeStruct((B, N), out_dtype),
        grid_spec=pltpu.PrefetchScalarGridSpec(
            num_scalar_prefetch=0,
            grid=(gm, gn, gk),
            in_specs=[
                pl.BlockSpec((tm, tk), lambda i, j, k: (i, k)),   # x tile
                pl.BlockSpec((tn, tk), lambda i, j, k: (j, k)),   # w tile (out, in)
            ],
            out_specs=pl.BlockSpec((tm, tn), lambda i, j, k: (i, j)),
            scratch_shapes=[pltpu.VMEM((tm, tn), jnp.float32)],
        ),
        compiler_params=pltpu.CompilerParams(
            dimension_semantics=("parallel", "parallel", "arbitrary"),
        ),
        cost_estimate=cost,
    )(x, weight)


if __name__ == "__main__":
    key = jax.random.PRNGKey(0)
    kx, kw = jax.random.split(key)

    batch = 8
    input_size = 32
    output_size = 16

    # Deterministic synthetic input and parameter (no checkpoint load).
    x = jax.random.normal(kx, (batch, input_size), dtype=jnp.float32)
    # Mimic nn.Linear default init scale: U(-1/sqrt(in), 1/sqrt(in))
    bound = 1.0 / jnp.sqrt(jnp.float32(input_size))
    weight = jax.random.uniform(
        kw, (output_size, input_size), dtype=jnp.float32,
        minval=-bound, maxval=bound,
    )

    y = one_param_forward(x, weight)
    jax.block_until_ready(y)

    assert y.shape == (batch, output_size)
    assert y.dtype == x.dtype

    # Tight check against a reference with the same bf16 operand rounding
    # (default fast path) and f32 accumulation.
    y_ref_bf16 = jnp.dot(
        x.astype(jnp.bfloat16), weight.astype(jnp.bfloat16).T,
        preferred_element_type=jnp.float32)
    assert jnp.allclose(y, y_ref_bf16, atol=1e-3, rtol=1e-3)

    # Loose sanity check against the exact f32 nn.Linear semantics (the only
    # difference is bf16 rounding of the operands).
    assert jnp.allclose(y, x @ weight.T, atol=1e-1, rtol=1e-1)

    print("KERNEL_OK")
</pallas_src>

<mosaic_0001>
module attributes {stable_mosaic.version = 11 : i64} {
  func.func @_linear_kernel(%arg0: i32, %arg1: i32, %arg2: i32, %arg3: memref<16x128xbf16, #tpu.memory_space<vmem>>, %arg4: memref<128x128xbf16, #tpu.memory_space<vmem>>, %arg5: memref<16x128xf32, #tpu.memory_space<vmem>>, %arg6: memref<16x128xf32, #tpu.memory_space<vmem>>) attributes {dimension_semantics = [#tpu.dimension_semantics<parallel>, #tpu.dimension_semantics<parallel>, #tpu.dimension_semantics<arbitrary>], iteration_bounds = array<i64: 1, 1, 1>, scalar_prefetch = 0 : i64, scratch_operands = 1 : i64, tpu.core_type = #tpu.core_type<tc>, window_params = [{transform_indices = @transform_0, window_bounds = array<i64: 16, 128>}, {transform_indices = @transform_1, window_bounds = array<i64: 128, 128>}, {transform_indices = @transform_2, window_bounds = array<i64: 16, 128>}]} {
    %c0 = arith.constant 0 : index
    %c0_0 = arith.constant 0 : index
    %0 = vector.load %arg3[%c0, %c0_0] : memref<16x128xbf16, #tpu.memory_space<vmem>>, vector<16x128xbf16>
    %c0_1 = arith.constant 0 : index
    %c0_2 = arith.constant 0 : index
    %1 = vector.load %arg4[%c0_1, %c0_2] : memref<128x128xbf16, #tpu.memory_space<vmem>>, vector<128x128xbf16>
    %c128_i32 = arith.constant 128 : i32
    %2 = arith.muli %arg2, %c128_i32 : i32
    %3 = tpu.iota {dimensions = array<i32: 1>} : vector<16x128xi32>
    %4 = vector.broadcast %2 : i32 to vector<16x128xi32>
    %5 = arith.addi %4, %3 : vector<16x128xi32>
    %6 = tpu.iota {dimensions = array<i32: 1>} : vector<128x128xi32>
    %7 = vector.broadcast %2 : i32 to vector<128x128xi32>
    %8 = arith.addi %7, %6 : vector<128x128xi32>
    %c32_i32 = arith.constant 32 : i32
    %9 = vector.broadcast %c32_i32 : i32 to vector<16x128xi32>
    %10 = arith.cmpi slt, %5, %9 : vector<16x128xi32>
    %cst = arith.constant 0.000000e+00 : bf16
    %11 = vector.broadcast %cst : bf16 to vector<16x128xbf16>
    %12 = arith.select %10, %0, %11 : vector<16x128xi1>, vector<16x128xbf16>
    %c32_i32_3 = arith.constant 32 : i32
    %13 = vector.broadcast %c32_i32_3 : i32 to vector<128x128xi32>
    %14 = arith.cmpi slt, %8, %13 : vector<128x128xi32>
    %cst_4 = arith.constant 0.000000e+00 : bf16
    %15 = vector.broadcast %cst_4 : bf16 to vector<128x128xbf16>
    %16 = arith.select %14, %1, %15 : vector<128x128xi1>, vector<128x128xbf16>
    %cst_5 = arith.constant dense<0.000000e+00> : vector<16x128xf32>
    %17 = tpu.matmul %12, %16, %cst_5 {dimension_numbers = #tpu.dot_dimension_numbers<[1], [1], [0], [0], [0, 0, 1, 0], [], []>} : vector<16x128xbf16>, vector<128x128xbf16>, vector<16x128xf32> -> vector<16x128xf32>
    %c0_i32 = arith.constant 0 : i32
    %18 = arith.cmpi eq, %arg2, %c0_i32 : i32
    %19 = arith.extui %18 : i1 to i32
    %c0_i32_6 = arith.constant 0 : i32
    %20 = arith.cmpi ne, %19, %c0_i32_6 : i32
    scf.if %20 {
      %c0_11 = arith.constant 0 : index
      %c0_12 = arith.constant 0 : index
      %27 = vector.load %arg6[%c0_11, %c0_12] : memref<16x128xf32, #tpu.memory_space<vmem>>, vector<16x128xf32>
      tpu.vector_store %arg6[%c0_11, %c0_12], %17 {strides = array<i32>} : memref<16x128xf32, #tpu.memory_space<vmem>>, vector<16x128xf32>,
    } else {
    }
    %c0_i32_7 = arith.constant 0 : i32
    %21 = arith.cmpi sgt, %arg2, %c0_i32_7 : i32
    %22 = arith.extui %21 : i1 to i32
    %c0_i32_8 = arith.constant 0 : i32
    %23 = arith.cmpi ne, %22, %c0_i32_8 : i32
    scf.if %23 {
      %c0_11 = arith.constant 0 : index
      %c0_12 = arith.constant 0 : index
      %27 = vector.load %arg6[%c0_11, %c0_12] : memref<16x128xf32, #tpu.memory_space<vmem>>, vector<16x128xf32>
      %28 = arith.addf %27, %17 : vector<16x128xf32>
      %c0_13 = arith.constant 0 : index
      %c0_14 = arith.constant 0 : index
      %29 = vector.load %arg6[%c0_13, %c0_14] : memref<16x128xf32, #tpu.memory_space<vmem>>, vector<16x128xf32>
      tpu.vector_store %arg6[%c0_13, %c0_14], %28 {strides = array<i32>} : memref<16x128xf32, #tpu.memory_space<vmem>>, vector<16x128xf32>,
    } else {
    }
    %c0_i32_9 = arith.constant 0 : i32
    %24 = arith.cmpi eq, %arg2, %c0_i32_9 : i32
    %25 = arith.extui %24 : i1 to i32
    %c0_i32_10 = arith.constant 0 : i32
    %26 = arith.cmpi ne, %25, %c0_i32_10 : i32
    scf.if %26 {
      %c0_11 = arith.constant 0 : index
      %c0_12 = arith.constant 0 : index
      %27 = vector.load %arg6[%c0_11, %c0_12] : memref<16x128xf32, #tpu.memory_space<vmem>>, vector<16x128xf32>
      %c0_13 = arith.constant 0 : index
      %c0_14 = arith.constant 0 : index
      %28 = vector.load %arg5[%c0_13, %c0_14] : memref<16x128xf32, #tpu.memory_space<vmem>>, vector<16x128xf32>
      tpu.vector_store %arg5[%c0_13, %c0_14], %27 {strides = array<i32>} : memref<16x128xf32, #tpu.memory_space<vmem>>, vector<16x128xf32>,
    } else {
    }
    return
  }
  func.func @transform_0(%arg0: i32, %arg1: i32, %arg2: i32) -> (i32, i32) {
    %c0_i32 = arith.constant 0 : i32
    return %arg0, %arg2 : i32, i32
  }
  func.func @transform_1(%arg0: i32, %arg1: i32, %arg2: i32) -> (i32, i32) {
    %c0_i32 = arith.constant 0 : i32
    return %arg1, %arg2 : i32, i32
  }
  func.func @transform_2(%arg0: i32, %arg1: i32, %arg2: i32) -> (i32, i32) {
    %c0_i32 = arith.constant 0 : i32
    return %arg0, %arg1 : i32, i32
  }
}

</mosaic_0001>

<bundles_post_ra>
// kernel: tpu_custom_call.1
= control target key start
LH: loop header
LB: loop body
LE: loop exit
PB: predicated region body
PF: predicated region fallthrough
CT: control target
= control target key end

     0   :  { %7 = vsyncpa [#allocation4], 0  ;;  %s406_s0 = inlined_call_operand.hbm [shape: bf16[8,32], index: 0, kind: input, shape index: {}]   ;;  %s407_s1 = inlined_call_operand.hbm [shape: bf16[16,32], index: 1, kind: input, shape index: {}]   ;;  %s408_s2 = inlined_call_operand.hbm [shape: f32[8,16], index: 2, kind: output, shape index: {}]  }
   0x1   :  { %8 = vsyncpa [#allocation7], 0 }
   0x2   :  { %9 = vsyncpa [#allocation5], 0 }
   0x3   :  { %14 = vsyncadd [#allocation4], 64  ;;  %s333_s9 = smov [#allocation3]  }
   0x4   :  { %s15_s10 = sshll.u32 %s333_s9, 4  ;;  %s16_s10 = int_to_ptr.vmem [resolvable:$true] %s15_s10 }
   0x5   :  { %s275_s11 = scalar_lea.vmem %s16_s10, 64  ;;  %s279_s12 = scalar_lea.vmem %s16_s10, 128 }
   0x6   :  { %p276_p0 = scmp.ne.s32.totalorder %s16_s10, %s275_s11  ;;  %p280_p1 = scmp.lt.s32.totalorder %s16_s10, %s16_s10 }
   0x7   :  { %p281_p2 = scmp.lt.s32.totalorder %s279_s12, %s275_s11 }
   0x9   :  { %p282_p3 = por %p281_p2, %p280_p1 }
   0xb   :  { %p283_p4 = pnand %p282_p3, %p276_p0 }
   0xd   :  { %286 = shalt.err (!%p283_p4)
}
   0xe   :  { %s334_s13 = smov 64   ;;  %s335_s14 = smov 4  }
   0xf   :  { %21 = dma.hbm_to_vmem [thread:$0]  %s406_s0, 64, %s16_s10, [#allocation4], %s334_s13, %s334_s13, %s335_s14  }
  0x10   :  { %26 = vsyncadd [#allocation7], 896  ;;  %s336_s17 = smov [#allocation6]  }
  0x11   :  { %s27_s18 = sshll.u32 %s336_s17, 4  ;;  %s28_s18 = int_to_ptr.vmem [resolvable:$true] %s27_s18 }
  0x12   :  { %s295_s19 = scalar_lea.vmem %s28_s18, 128  ;;  %s299_s20 = scalar_lea.vmem %s28_s18, 1024 }
  0x13   :  { %p296_p5 = scmp.ne.s32.totalorder %s28_s18, %s295_s19  ;;  %p300_p6 = scmp.lt.s32.totalorder %s28_s18, %s28_s18 }
  0x14   :  { %p301_p7 = scmp.lt.s32.totalorder %s299_s20, %s295_s19 }
  0x16   :  { %p302_p8 = por %p301_p7, %p300_p6 }
  0x18   :  { %p303_p9 = pnand %p302_p8, %p296_p5 }
  0x1a   :  { %306 = shalt.err (!%p303_p9)
}
  0x1b   :  { %33 = dma.hbm_to_vmem [thread:$0]  %s407_s1, 128, %s28_s18, [#allocation7], %s334_s13, %s334_s13, %s335_s14  }
  0x1c   :  { %327 = dma.done.wait [#allocation4], 128  }
  0x1d   :  { %328 = vsyncadd [#allocation4], 4294967168 }
  0x1e   :  { %329 = dma.done.wait [#allocation7], 1024  }
  0x1f   :  { %330 = vsyncadd [#allocation7], 4294966272  ;;  %v60_v0 = vlaneseq  ;;  %v337_v1 = vmov 0.0   ;;  %vm338_vm0 = vmmov 0   ;;  %v57_v4 = vld [vmem:[#allocation6 + $0x38] sm:$0xf] }
  0x20   :  { %238 = vmatprep.subr.bf16.mxu0 %v337_v1  ;;  %254 = vmatprep.mubr.msk.bf16.mxu0 %vm338_vm0, %v337_v1  ;;  %v58_v5 = vld [vmem:[#allocation6 + $0x3c] sm:$0xf]  ;;  %v55_v9 = vld [vmem:[#allocation6 + $0x30] sm:$0xf]  ;;  %v56_v10 = vld [vmem:[#allocation6 + $0x34] sm:$0xf] }
  0x21   :  { %v61_v2 = vand.u32 127, %v60_v0  ;;  %v53_v14 = vld [vmem:[#allocation6 + $0x28] sm:$0xf]  ;;  %v54_v15 = vld [vmem:[#allocation6 + $0x2c] sm:$0xf] }
  0x22   :  { %v51_v19 = vld [vmem:[#allocation6 + $0x20] sm:$0xf]  ;;  %v52_v20 = vld [vmem:[#allocation6 + $0x24] sm:$0xf]  ;;  %v49_v24 = vld [vmem:[#allocation6 + $0x18] sm:$0xf] }
  0x23   :  { %vm64_vm1 = vcmp.lt.s32.totalorder %v61_v2, 32  ;;  %v50_v25 = vld [vmem:[#allocation6 + $0x1c] sm:$0xf]  ;;  %v47_v29 = vld [vmem:[#allocation6 + $0x10] sm:$0xf] }
  0x24   :  { %vm363_vm2 = vmpackc.low %vm64_vm1, %vm64_vm1  ;;  %v48_v30 = vld [vmem:[#allocation6 + $0x14] sm:$0xf]  ;;  %v45_v34 = vld [vmem:[#allocation6 + $0x8] sm:$0xf] }
  0x25   :  { %v82_v6 = vsel %vm363_vm2, %v57_v4, 0  ;;  %v83_v7 = vsel %vm363_vm2, %v58_v5, 0  ;;  %v80_v11 = vsel %vm363_vm2, %v55_v9, 0  ;;  %v81_v12 = vsel %vm363_vm2, %v56_v10, 0  ;;  %v46_v35 = vld [vmem:[#allocation6 + $0xc] sm:$0xf] }
  0x26   :  { %v228_v8 = vcombine.low %v82_v6, %v83_v7  ;;  %v227_v13 = vcombine.low %v80_v11, %v81_v12  ;;  %v78_v16 = vsel %vm363_vm2, %v53_v14, 0  ;;  %v79_v17 = vsel %vm363_vm2, %v54_v15, 0  ;;  %v43_v39 = vld [vmem:[#allocation6] sm:$0xf]  ;;  %v44_v40 = vld [vmem:[#allocation6 + $0x4] sm:$0xf] }
  0x27   :  { %v226_v18 = vcombine.low %v78_v16, %v79_v17  ;;  %v76_v21 = vsel %vm363_vm2, %v51_v19, 0  ;;  %v77_v22 = vsel %vm363_vm2, %v52_v20, 0  ;;  %v74_v26 = vsel %vm363_vm2, %v49_v24, 0  ;;  %v41_v44 = vld [vmem:[#allocation3] sm:$0xf] }
  0x28   :  { %239 = vmatpush3.bf16.xpose.msra.mxu0 %v228_v8  ;;  %v225_v23 = vcombine.low %v76_v21, %v77_v22  ;;  %v75_v27 = vsel %vm363_vm2, %v50_v25, 0  ;;  %v72_v31 = vsel %vm363_vm2, %v47_v29, 0  ;;  %v73_v32 = vsel %vm363_vm2, %v48_v30, 0  ;;  %v42_v45 = vld [vmem:[#allocation3 + $0x4] sm:$0xf] }
  0x29   :  { %240 = vmatprep.subr.bf16.mxu0 %v337_v1  ;;  %v224_v28 = vcombine.low %v74_v26, %v75_v27  ;;  %v223_v33 = vcombine.low %v72_v31, %v73_v32  ;;  %v70_v36 = vsel %vm363_vm2, %v45_v34, 0  ;;  %v71_v37 = vsel %vm363_vm2, %v46_v35, 0 }
  0x2a   :  { %v222_v38 = vcombine.low %v70_v36, %v71_v37  ;;  %v68_v41 = vsel %vm363_vm2, %v43_v39, 0  ;;  %v69_v42 = vsel %vm363_vm2, %v44_v40, 0  ;;  %v66_v46 = vsel %vm363_vm2, %v41_v44, 0 }
  0x2b   :  { %v221_v43 = vcombine.low %v68_v41, %v69_v42  ;;  %v67_v47 = vsel %vm363_vm2, %v42_v45, 0 }
  0x2c   :  { %v220_v48 = vcombine.low %v66_v46, %v67_v47 }
  0x30   :  { %241 = vmatpush3.bf16.xpose.msra.mxu0 %v227_v13 }
  0x31   :  { %242 = vmatprep.subr.bf16.mxu0 %v337_v1 }
  0x38   :  { %243 = vmatpush3.bf16.xpose.msra.mxu0 %v226_v18 }
  0x39   :  { %244 = vmatprep.subr.bf16.mxu0 %v337_v1 }
  0x40   :  { %245 = vmatpush3.bf16.xpose.msra.mxu0 %v225_v23 }
  0x41   :  { %246 = vmatprep.subr.bf16.mxu0 %v337_v1 }
  0x48   :  { %247 = vmatpush3.bf16.xpose.msra.mxu0 %v224_v28 }
  0x49   :  { %248 = vmatprep.subr.bf16.mxu0 %v337_v1 }
  0x50   :  { %249 = vmatpush3.bf16.xpose.msra.mxu0 %v223_v33 }
  0x51   :  { %250 = vmatprep.subr.bf16.mxu0 %v337_v1 }
  0x58   :  { %251 = vmatpush3.bf16.xpose.msra.mxu0 %v222_v38 }
  0x59   :  { %252 = vmatprep.subr.bf16.mxu0 %v337_v1 }
  0x60   :  { %253 = vmatpush3.bf16.xpose.msra.mxu0 %v221_v43 }
  0x67   :  { %255 = vmatmul.mubr.bf16.vlgmr.msra.gmra.mxu0 %v220_v48 }
 0x127   :  { %v172_v49 = vpop.f32.mrf.mxu0 }
 0x128   :  { %200 = vst [vmem:[#allocation8] sm:$0xff] %v172_v49 }
 0x129   :  { %v256_v50 = vpop.f32.mrf.mxu0 }
 0x12b   :  { %v175_v51 = vpop.f32.mrf.mxu0 }
 0x12c   :  { %201 = vst [vmem:[#allocation8 + $0x8] sm:$0xff] %v175_v51 }
 0x12d   :  { %v257_v52 = vpop.f32.mrf.mxu0 }
 0x12e   :  { %206 = vsyncadd [#allocation5], 128  ;;  %s339_s0 = smov [#allocation8]  }
 0x12f   :  { %s207_s1 = sshll.u32 %s339_s0, 4  ;;  %s208_s1 = int_to_ptr.vmem [resolvable:$true] %s207_s1 }
 0x130   :  { %s307_s23 = scalar_lea.vmem %s208_s1, 128  ;;  %s311_s24 = scalar_lea.vmem %s208_s1, 256 }
 0x131   :  { %p308_p10 = scmp.ne.s32.totalorder %s208_s1, %s307_s23  ;;  %p312_p11 = scmp.lt.s32.totalorder %s208_s1, %s208_s1 }
 0x132   :  { %p313_p12 = scmp.lt.s32.totalorder %s311_s24, %s307_s23 }
 0x134   :  { %p314_p13 = por %p313_p12, %p312_p11 }
 0x136   :  { %p315_p0 = pnand %p314_p13, %p308_p10 }
 0x138   :  { %318 = shalt.err (!%p315_p0)
}
 0x139   :  { %s340_s25 = smov 128   ;;  %s341_s26 = smov 8  }
 0x13a   :  { %213 = dma.vmem_to_hbm [thread:$0]  %s208_s1, 128, %s408_s2, [#allocation5], %s340_s25, %s340_s25, %s341_s26  }
 0x13b   :  { %331 = dma.done.wait [#allocation5], 256  }
 0x13c   :  { %332 = vsyncadd [#allocation5], 4294967040 }
 0x13d   :  { %217 = vsyncpa [#allocation4], 1 }
 0x13e   :  { %218 = vsyncpa [#allocation7], 1 }
 0x13f   :  { %219 = vsyncpa [#allocation5], 1 }

</bundles_post_ra>
